<compile_context>
chip_gen: v7x
topology: tpu7x:2x2x1
jax: 0.10.0
libtpu: 0.0.40
codegen_flags: <defaults>
</compile_context>

<pallas_src>
import functools

import jax
import jax.numpy as jnp
from jax.experimental import pallas as pl
from jax.experimental.pallas import tpu as pltpu

LANE = 128  # lane-dense output width


def _mlp_kernel(x_ref, w1b_ref, w2b_ref, o_ref):
    x = x_ref[...]          # (B, D_in)        f32
    w1b = w1b_ref[...]      # (D_in + 1, H)    last row = b1
    w2b = w2b_ref[...]      # (H + 1, N_pad)   last row = b2 (zero-padded)

    B, d_in = x.shape
    h_dim = w1b.shape[1]
    n_pad = w2b.shape[1]

    # ---- fc1: bias row seeds the accumulator, then D_in VPU FMA outer
    # products (static unroll, D_in = 4). ----
    h = jnp.broadcast_to(w1b[d_in:d_in + 1, :], (B, h_dim))
    for d in range(d_in):
        h = h + x[:, d:d + 1] * w1b[d:d + 1, :]
    h = jnp.maximum(h, 0.0)                     # ReLU on the VPU

    # ---- fc2: H outer products accumulated onto a lane-dense padded slab.
    # Split across a few independent accumulators to break the serial add
    # chain (H=32 -> 4 chains of depth 8 + a 2-level combine). ----
    n_acc = 4 if h_dim >= 4 else max(h_dim, 1)
    groups = [list(range(a, h_dim, n_acc)) for a in range(n_acc)]
    groups = [g for g in groups if g]

    bias2 = jnp.broadcast_to(w2b[h_dim:h_dim + 1, :], (B, n_pad))
    accs = []
    for a, grp in enumerate(groups):
        if a == 0:
            acc = bias2
            rest = grp
        else:
            d0 = grp[0]
            acc = h[:, d0:d0 + 1] * w2b[d0:d0 + 1, :]
            rest = grp[1:]
        for d in rest:
            acc = acc + h[:, d:d + 1] * w2b[d:d + 1, :]
        accs.append(acc)

    y = accs[0]
    if len(accs) == 4:                          # balanced 2-level combine
        y = (accs[0] + accs[1]) + (accs[2] + accs[3])
    else:
        for a in accs[1:]:
            y = y + a

    o_ref[...] = y.astype(o_ref.dtype)


def pack_params(w1, b1, w2, b2, lane=LANE):
    """Fold biases into the weight operands and pad fc2's output dim to a
    lane-dense width. Done ONCE, outside the hot path."""
    d_in, hidden = w1.shape
    d_out = w2.shape[1]
    n_pad = max(lane, d_out)
    w1b = jnp.concatenate([w1, b1.reshape(1, hidden)], axis=0)          # (D_in+1, H)
    w2_pad = jnp.zeros((hidden, n_pad), w2.dtype).at[:, :d_out].set(w2)
    b2_pad = jnp.zeros((1, n_pad), b2.dtype).at[0, :d_out].set(b2)
    w2b = jnp.concatenate([w2_pad, b2_pad], axis=0)                     # (H+1, N_pad)
    return w1b, w2b, d_out


@functools.partial(jax.jit, static_argnames=("d_out",))
def mlp_forward(x, w1b, w2b, *, d_out):
    """x: (B, D_in); w1b/w2b from pack_params(). Returns (B, d_out)."""
    B, d_in = x.shape
    hidden = w1b.shape[1]
    n_pad = w2b.shape[1]

    cost = pl.CostEstimate(
        flops=2 * B * d_in * hidden + 2 * B * hidden * n_pad,
        transcendentals=0,
        bytes_accessed=4 * (x.size + w1b.size + w2b.size + B * n_pad),
    )

    y_pad = pl.pallas_call(
        _mlp_kernel,
        out_shape=jax.ShapeDtypeStruct((B, n_pad), x.dtype),
        in_specs=[
            pl.BlockSpec(memory_space=pltpu.MemorySpace.VMEM),
            pl.BlockSpec(memory_space=pltpu.MemorySpace.VMEM),
            pl.BlockSpec(memory_space=pltpu.MemorySpace.VMEM),
        ],
        out_specs=pl.BlockSpec(memory_space=pltpu.MemorySpace.VMEM),
        cost_estimate=cost,
    )(x, w1b, w2b)

    # TODO(synk): if used per RL environment step, batch many states per call
    # (then tile the batch axis with "parallel" semantics for v7x's 2 TCs)
    # instead of paying a launch + DMA setup per 8-row inference.
    return y_pad[:, :d_out]


if __name__ == "__main__":
    # CartPole-style dims: state dim 4, hidden 32, 2 actions; small batch.
    batch, input_dim, hidden_units, output_units = 8, 4, 32, 2

    key = jax.random.PRNGKey(0)
    kx, k1, k2, k3, k4 = jax.random.split(key, 5)
    x = jax.random.normal(kx, (batch, input_dim), jnp.float32)

    # torch.nn.Linear-style U(-1/sqrt(fan_in), 1/sqrt(fan_in)) init.
    lim1 = 1.0 / (input_dim ** 0.5)
    lim2 = 1.0 / (hidden_units ** 0.5)
    w1 = jax.random.uniform(k1, (input_dim, hidden_units), jnp.float32, -lim1, lim1)
    b1 = jax.random.uniform(k2, (hidden_units,), jnp.float32, -lim1, lim1)
    w2 = jax.random.uniform(k3, (hidden_units, output_units), jnp.float32, -lim2, lim2)
    b2 = jax.random.uniform(k4, (output_units,), jnp.float32, -lim2, lim2)

    w1b, w2b, d_out = pack_params(w1, b1, w2, b2)

    y = mlp_forward(x, w1b, w2b, d_out=d_out)
    y = jax.block_until_ready(y)

    # Pure-JAX reference (same math as the PyTorch module).
    ref = jnp.maximum(x @ w1 + b1, 0.0) @ w2 + b2
    assert y.shape == (batch, output_units)
    assert jnp.allclose(y, ref, atol=1e-5, rtol=1e-5)

    print("KERNEL_OK")
</pallas_src>

<mosaic_0001>
module attributes {stable_mosaic.version = 11 : i64} {
  func.func @_mlp_kernel(%arg0: memref<8x4xf32, #tpu.memory_space<vmem>>, %arg1: memref<5x32xf32, #tpu.memory_space<vmem>>, %arg2: memref<33x128xf32, #tpu.memory_space<vmem>>, %arg3: memref<8x128xf32, #tpu.memory_space<vmem>>) attributes {dimension_semantics = [], scalar_prefetch = 0 : i64, scratch_operands = 0 : i64, tpu.core_type = #tpu.core_type<tc>} {
    %c0 = arith.constant 0 : index
    %c0_0 = arith.constant 0 : index
    %0 = vector.load %arg0[%c0, %c0_0] : memref<8x4xf32, #tpu.memory_space<vmem>>, vector<8x4xf32>
    %c0_1 = arith.constant 0 : index
    %c0_2 = arith.constant 0 : index
    %1 = vector.load %arg1[%c0_1, %c0_2] : memref<5x32xf32, #tpu.memory_space<vmem>>, vector<5x32xf32>
    %c0_3 = arith.constant 0 : index
    %c0_4 = arith.constant 0 : index
    %2 = vector.load %arg2[%c0_3, %c0_4] : memref<33x128xf32, #tpu.memory_space<vmem>>, vector<33x128xf32>
    %3 = vector.extract_strided_slice %1 {offsets = [4, 0], sizes = [1, 32], strides = [1, 1]} : vector<5x32xf32> to vector<1x32xf32>
    %4 = vector.shape_cast %3 : vector<1x32xf32> to vector<1x32xf32>
    %5 = vector.broadcast %4 : vector<1x32xf32> to vector<8x32xf32>
    %6 = vector.extract_strided_slice %0 {offsets = [0, 0], sizes = [8, 1], strides = [1, 1]} : vector<8x4xf32> to vector<8x1xf32>
    %7 = vector.extract_strided_slice %1 {offsets = [0, 0], sizes = [1, 32], strides = [1, 1]} : vector<5x32xf32> to vector<1x32xf32>
    %8 = vector.broadcast %6 : vector<8x1xf32> to vector<8x32xf32>
    %9 = vector.broadcast %7 : vector<1x32xf32> to vector<8x32xf32>
    %10 = arith.mulf %8, %9 : vector<8x32xf32>
    %11 = arith.addf %5, %10 : vector<8x32xf32>
    %12 = vector.extract_strided_slice %0 {offsets = [0, 1], sizes = [8, 1], strides = [1, 1]} : vector<8x4xf32> to vector<8x1xf32>
    %13 = vector.extract_strided_slice %1 {offsets = [1, 0], sizes = [1, 32], strides = [1, 1]} : vector<5x32xf32> to vector<1x32xf32>
    %14 = vector.broadcast %12 : vector<8x1xf32> to vector<8x32xf32>
    %15 = vector.broadcast %13 : vector<1x32xf32> to vector<8x32xf32>
    %16 = arith.mulf %14, %15 : vector<8x32xf32>
    %17 = arith.addf %11, %16 : vector<8x32xf32>
    %18 = vector.extract_strided_slice %0 {offsets = [0, 2], sizes = [8, 1], strides = [1, 1]} : vector<8x4xf32> to vector<8x1xf32>
    %19 = vector.extract_strided_slice %1 {offsets = [2, 0], sizes = [1, 32], strides = [1, 1]} : vector<5x32xf32> to vector<1x32xf32>
    %20 = vector.broadcast %18 : vector<8x1xf32> to vector<8x32xf32>
    %21 = vector.broadcast %19 : vector<1x32xf32> to vector<8x32xf32>
    %22 = arith.mulf %20, %21 : vector<8x32xf32>
    %23 = arith.addf %17, %22 : vector<8x32xf32>
    %24 = vector.extract_strided_slice %0 {offsets = [0, 3], sizes = [8, 1], strides = [1, 1]} : vector<8x4xf32> to vector<8x1xf32>
    %25 = vector.extract_strided_slice %1 {offsets = [3, 0], sizes = [1, 32], strides = [1, 1]} : vector<5x32xf32> to vector<1x32xf32>
    %26 = vector.broadcast %24 : vector<8x1xf32> to vector<8x32xf32>
    %27 = vector.broadcast %25 : vector<1x32xf32> to vector<8x32xf32>
    %28 = arith.mulf %26, %27 : vector<8x32xf32>
    %29 = arith.addf %23, %28 : vector<8x32xf32>
    %cst = arith.constant 0.000000e+00 : f32
    %30 = vector.broadcast %cst : f32 to vector<8x32xf32>
    %31 = arith.maximumf %29, %30 : vector<8x32xf32>
    %32 = vector.extract_strided_slice %2 {offsets = [32, 0], sizes = [1, 128], strides = [1, 1]} : vector<33x128xf32> to vector<1x128xf32>
    %33 = vector.shape_cast %32 : vector<1x128xf32> to vector<1x128xf32>
    %34 = vector.broadcast %33 : vector<1x128xf32> to vector<8x128xf32>
    %35 = vector.extract_strided_slice %31 {offsets = [0, 0], sizes = [8, 1], strides = [1, 1]} : vector<8x32xf32> to vector<8x1xf32>
    %36 = vector.extract_strided_slice %2 {offsets = [0, 0], sizes = [1, 128], strides = [1, 1]} : vector<33x128xf32> to vector<1x128xf32>
    %37 = vector.broadcast %35 : vector<8x1xf32> to vector<8x128xf32>
    %38 = vector.broadcast %36 : vector<1x128xf32> to vector<8x128xf32>
    %39 = arith.mulf %37, %38 : vector<8x128xf32>
    %40 = arith.addf %34, %39 : vector<8x128xf32>
    %41 = vector.extract_strided_slice %31 {offsets = [0, 4], sizes = [8, 1], strides = [1, 1]} : vector<8x32xf32> to vector<8x1xf32>
    %42 = vector.extract_strided_slice %2 {offsets = [4, 0], sizes = [1, 128], strides = [1, 1]} : vector<33x128xf32> to vector<1x128xf32>
    %43 = vector.broadcast %41 : vector<8x1xf32> to vector<8x128xf32>
    %44 = vector.broadcast %42 : vector<1x128xf32> to vector<8x128xf32>
    %45 = arith.mulf %43, %44 : vector<8x128xf32>
    %46 = arith.addf %40, %45 : vector<8x128xf32>
    %47 = vector.extract_strided_slice %31 {offsets = [0, 8], sizes = [8, 1], strides = [1, 1]} : vector<8x32xf32> to vector<8x1xf32>
    %48 = vector.extract_strided_slice %2 {offsets = [8, 0], sizes = [1, 128], strides = [1, 1]} : vector<33x128xf32> to vector<1x128xf32>
    %49 = vector.broadcast %47 : vector<8x1xf32> to vector<8x128xf32>
    %50 = vector.broadcast %48 : vector<1x128xf32> to vector<8x128xf32>
    %51 = arith.mulf %49, %50 : vector<8x128xf32>
    %52 = arith.addf %46, %51 : vector<8x128xf32>
    %53 = vector.extract_strided_slice %31 {offsets = [0, 12], sizes = [8, 1], strides = [1, 1]} : vector<8x32xf32> to vector<8x1xf32>
    %54 = vector.extract_strided_slice %2 {offsets = [12, 0], sizes = [1, 128], strides = [1, 1]} : vector<33x128xf32> to vector<1x128xf32>
    %55 = vector.broadcast %53 : vector<8x1xf32> to vector<8x128xf32>
    %56 = vector.broadcast %54 : vector<1x128xf32> to vector<8x128xf32>
    %57 = arith.mulf %55, %56 : vector<8x128xf32>
    %58 = arith.addf %52, %57 : vector<8x128xf32>
    %59 = vector.extract_strided_slice %31 {offsets = [0, 16], sizes = [8, 1], strides = [1, 1]} : vector<8x32xf32> to vector<8x1xf32>
    %60 = vector.extract_strided_slice %2 {offsets = [16, 0], sizes = [1, 128], strides = [1, 1]} : vector<33x128xf32> to vector<1x128xf32>
    %61 = vector.broadcast %59 : vector<8x1xf32> to vector<8x128xf32>
    %62 = vector.broadcast %60 : vector<1x128xf32> to vector<8x128xf32>
    %63 = arith.mulf %61, %62 : vector<8x128xf32>
    %64 = arith.addf %58, %63 : vector<8x128xf32>
    %65 = vector.extract_strided_slice %31 {offsets = [0, 20], sizes = [8, 1], strides = [1, 1]} : vector<8x32xf32> to vector<8x1xf32>
    %66 = vector.extract_strided_slice %2 {offsets = [20, 0], sizes = [1, 128], strides = [1, 1]} : vector<33x128xf32> to vector<1x128xf32>
    %67 = vector.broadcast %65 : vector<8x1xf32> to vector<8x128xf32>
    %68 = vector.broadcast %66 : vector<1x128xf32> to vector<8x128xf32>
    %69 = arith.mulf %67, %68 : vector<8x128xf32>
    %70 = arith.addf %64, %69 : vector<8x128xf32>
    %71 = vector.extract_strided_slice %31 {offsets = [0, 24], sizes = [8, 1], strides = [1, 1]} : vector<8x32xf32> to vector<8x1xf32>
    %72 = vector.extract_strided_slice %2 {offsets = [24, 0], sizes = [1, 128], strides = [1, 1]} : vector<33x128xf32> to vector<1x128xf32>
    %73 = vector.broadcast %71 : vector<8x1xf32> to vector<8x128xf32>
    %74 = vector.broadcast %72 : vector<1x128xf32> to vector<8x128xf32>
    %75 = arith.mulf %73, %74 : vector<8x128xf32>
    %76 = arith.addf %70, %75 : vector<8x128xf32>
    %77 = vector.extract_strided_slice %31 {offsets = [0, 28], sizes = [8, 1], strides = [1, 1]} : vector<8x32xf32> to vector<8x1xf32>
    %78 = vector.extract_strided_slice %2 {offsets = [28, 0], sizes = [1, 128], strides = [1, 1]} : vector<33x128xf32> to vector<1x128xf32>
    %79 = vector.broadcast %77 : vector<8x1xf32> to vector<8x128xf32>
    %80 = vector.broadcast %78 : vector<1x128xf32> to vector<8x128xf32>
    %81 = arith.mulf %79, %80 : vector<8x128xf32>
    %82 = arith.addf %76, %81 : vector<8x128xf32>
    %83 = vector.extract_strided_slice %31 {offsets = [0, 1], sizes = [8, 1], strides = [1, 1]} : vector<8x32xf32> to vector<8x1xf32>
    %84 = vector.extract_strided_slice %2 {offsets = [1, 0], sizes = [1, 128], strides = [1, 1]} : vector<33x128xf32> to vector<1x128xf32>
    %85 = vector.broadcast %83 : vector<8x1xf32> to vector<8x128xf32>
    %86 = vector.broadcast %84 : vector<1x128xf32> to vector<8x128xf32>
    %87 = arith.mulf %85, %86 : vector<8x128xf32>
    %88 = vector.extract_strided_slice %31 {offsets = [0, 5], sizes = [8, 1], strides = [1, 1]} : vector<8x32xf32> to vector<8x1xf32>
    %89 = vector.extract_strided_slice %2 {offsets = [5, 0], sizes = [1, 128], strides = [1, 1]} : vector<33x128xf32> to vector<1x128xf32>
    %90 = vector.broadcast %88 : vector<8x1xf32> to vector<8x128xf32>
    %91 = vector.broadcast %89 : vector<1x128xf32> to vector<8x128xf32>
    %92 = arith.mulf %90, %91 : vector<8x128xf32>
    %93 = arith.addf %87, %92 : vector<8x128xf32>
    %94 = vector.extract_strided_slice %31 {offsets = [0, 9], sizes = [8, 1], strides = [1, 1]} : vector<8x32xf32> to vector<8x1xf32>
    %95 = vector.extract_strided_slice %2 {offsets = [9, 0], sizes = [1, 128], strides = [1, 1]} : vector<33x128xf32> to vector<1x128xf32>
    %96 = vector.broadcast %94 : vector<8x1xf32> to vector<8x128xf32>
    %97 = vector.broadcast %95 : vector<1x128xf32> to vector<8x128xf32>
    %98 = arith.mulf %96, %97 : vector<8x128xf32>
    %99 = arith.addf %93, %98 : vector<8x128xf32>
    %100 = vector.extract_strided_slice %31 {offsets = [0, 13], sizes = [8, 1], strides = [1, 1]} : vector<8x32xf32> to vector<8x1xf32>
    %101 = vector.extract_strided_slice %2 {offsets = [13, 0], sizes = [1, 128], strides = [1, 1]} : vector<33x128xf32> to vector<1x128xf32>
    %102 = vector.broadcast %100 : vector<8x1xf32> to vector<8x128xf32>
    %103 = vector.broadcast %101 : vector<1x128xf32> to vector<8x128xf32>
    %104 = arith.mulf %102, %103 : vector<8x128xf32>
    %105 = arith.addf %99, %104 : vector<8x128xf32>
    %106 = vector.extract_strided_slice %31 {offsets = [0, 17], sizes = [8, 1], strides = [1, 1]} : vector<8x32xf32> to vector<8x1xf32>
    %107 = vector.extract_strided_slice %2 {offsets = [17, 0], sizes = [1, 128], strides = [1, 1]} : vector<33x128xf32> to vector<1x128xf32>
    %108 = vector.broadcast %106 : vector<8x1xf32> to vector<8x128xf32>
    %109 = vector.broadcast %107 : vector<1x128xf32> to vector<8x128xf32>
    %110 = arith.mulf %108, %109 : vector<8x128xf32>
    %111 = arith.addf %105, %110 : vector<8x128xf32>
    %112 = vector.extract_strided_slice %31 {offsets = [0, 21], sizes = [8, 1], strides = [1, 1]} : vector<8x32xf32> to vector<8x1xf32>
    %113 = vector.extract_strided_slice %2 {offsets = [21, 0], sizes = [1, 128], strides = [1, 1]} : vector<33x128xf32> to vector<1x128xf32>
    %114 = vector.broadcast %112 : vector<8x1xf32> to vector<8x128xf32>
    %115 = vector.broadcast %113 : vector<1x128xf32> to vector<8x128xf32>
    %116 = arith.mulf %114, %115 : vector<8x128xf32>
    %117 = arith.addf %111, %116 : vector<8x128xf32>
    %118 = vector.extract_strided_slice %31 {offsets = [0, 25], sizes = [8, 1], strides = [1, 1]} : vector<8x32xf32> to vector<8x1xf32>
    %119 = vector.extract_strided_slice %2 {offsets = [25, 0], sizes = [1, 128], strides = [1, 1]} : vector<33x128xf32> to vector<1x128xf32>
    %120 = vector.broadcast %118 : vector<8x1xf32> to vector<8x128xf32>
    %121 = vector.broadcast %119 : vector<1x128xf32> to vector<8x128xf32>
    %122 = arith.mulf %120, %121 : vector<8x128xf32>
    %123 = arith.addf %117, %122 : vector<8x128xf32>
    %124 = vector.extract_strided_slice %31 {offsets = [0, 29], sizes = [8, 1], strides = [1, 1]} : vector<8x32xf32> to vector<8x1xf32>
    %125 = vector.extract_strided_slice %2 {offsets = [29, 0], sizes = [1, 128], strides = [1, 1]} : vector<33x128xf32> to vector<1x128xf32>
    %126 = vector.broadcast %124 : vector<8x1xf32> to vector<8x128xf32>
    %127 = vector.broadcast %125 : vector<1x128xf32> to vector<8x128xf32>
    %128 = arith.mulf %126, %127 : vector<8x128xf32>
    %129 = arith.addf %123, %128 : vector<8x128xf32>
    %130 = vector.extract_strided_slice %31 {offsets = [0, 2], sizes = [8, 1], strides = [1, 1]} : vector<8x32xf32> to vector<8x1xf32>
    %131 = vector.extract_strided_slice %2 {offsets = [2, 0], sizes = [1, 128], strides = [1, 1]} : vector<33x128xf32> to vector<1x128xf32>
    %132 = vector.broadcast %130 : vector<8x1xf32> to vector<8x128xf32>
    %133 = vector.broadcast %131 : vector<1x128xf32> to vector<8x128xf32>
    %134 = arith.mulf %132, %133 : vector<8x128xf32>
    %135 = vector.extract_strided_slice %31 {offsets = [0, 6], sizes = [8, 1], strides = [1, 1]} : vector<8x32xf32> to vector<8x1xf32>
    %136 = vector.extract_strided_slice %2 {offsets = [6, 0], sizes = [1, 128], strides = [1, 1]} : vector<33x128xf32> to vector<1x128xf32>
    %137 = vector.broadcast %135 : vector<8x1xf32> to vector<8x128xf32>
    %138 = vector.broadcast %136 : vector<1x128xf32> to vector<8x128xf32>
    %139 = arith.mulf %137, %138 : vector<8x128xf32>
    %140 = arith.addf %134, %139 : vector<8x128xf32>
    %141 = vector.extract_strided_slice %31 {offsets = [0, 10], sizes = [8, 1], strides = [1, 1]} : vector<8x32xf32> to vector<8x1xf32>
    %142 = vector.extract_strided_slice %2 {offsets = [10, 0], sizes = [1, 128], strides = [1, 1]} : vector<33x128xf32> to vector<1x128xf32>
    %143 = vector.broadcast %141 : vector<8x1xf32> to vector<8x128xf32>
    %144 = vector.broadcast %142 : vector<1x128xf32> to vector<8x128xf32>
    %145 = arith.mulf %143, %144 : vector<8x128xf32>
    %146 = arith.addf %140, %145 : vector<8x128xf32>
    %147 = vector.extract_strided_slice %31 {offsets = [0, 14], sizes = [8, 1], strides = [1, 1]} : vector<8x32xf32> to vector<8x1xf32>
    %148 = vector.extract_strided_slice %2 {offsets = [14, 0], sizes = [1, 128], strides = [1, 1]} : vector<33x128xf32> to vector<1x128xf32>
    %149 = vector.broadcast %147 : vector<8x1xf32> to vector<8x128xf32>
    %150 = vector.broadcast %148 : vector<1x128xf32> to vector<8x128xf32>
    %151 = arith.mulf %149, %150 : vector<8x128xf32>
    %152 = arith.addf %146, %151 : vector<8x128xf32>
    %153 = vector.extract_strided_slice %31 {offsets = [0, 18], sizes = [8, 1], strides = [1, 1]} : vector<8x32xf32> to vector<8x1xf32>
    %154 = vector.extract_strided_slice %2 {offsets = [18, 0], sizes = [1, 128], strides = [1, 1]} : vector<33x128xf32> to vector<1x128xf32>
    %155 = vector.broadcast %153 : vector<8x1xf32> to vector<8x128xf32>
    %156 = vector.broadcast %154 : vector<1x128xf32> to vector<8x128xf32>
    %157 = arith.mulf %155, %156 : vector<8x128xf32>
    %158 = arith.addf %152, %157 : vector<8x128xf32>
    %159 = vector.extract_strided_slice %31 {offsets = [0, 22], sizes = [8, 1], strides = [1, 1]} : vector<8x32xf32> to vector<8x1xf32>
    %160 = vector.extract_strided_slice %2 {offsets = [22, 0], sizes = [1, 128], strides = [1, 1]} : vector<33x128xf32> to vector<1x128xf32>
    %161 = vector.broadcast %159 : vector<8x1xf32> to vector<8x128xf32>
    %162 = vector.broadcast %160 : vector<1x128xf32> to vector<8x128xf32>
    %163 = arith.mulf %161, %162 : vector<8x128xf32>
    %164 = arith.addf %158, %163 : vector<8x128xf32>
    %165 = vector.extract_strided_slice %31 {offsets = [0, 26], sizes = [8, 1], strides = [1, 1]} : vector<8x32xf32> to vector<8x1xf32>
    %166 = vector.extract_strided_slice %2 {offsets = [26, 0], sizes = [1, 128], strides = [1, 1]} : vector<33x128xf32> to vector<1x128xf32>
    %167 = vector.broadcast %165 : vector<8x1xf32> to vector<8x128xf32>
    %168 = vector.broadcast %166 : vector<1x128xf32> to vector<8x128xf32>
    %169 = arith.mulf %167, %168 : vector<8x128xf32>
    %170 = arith.addf %164, %169 : vector<8x128xf32>
    %171 = vector.extract_strided_slice %31 {offsets = [0, 30], sizes = [8, 1], strides = [1, 1]} : vector<8x32xf32> to vector<8x1xf32>
    %172 = vector.extract_strided_slice %2 {offsets = [30, 0], sizes = [1, 128], strides = [1, 1]} : vector<33x128xf32> to vector<1x128xf32>
    %173 = vector.broadcast %171 : vector<8x1xf32> to vector<8x128xf32>
    %174 = vector.broadcast %172 : vector<1x128xf32> to vector<8x128xf32>
    %175 = arith.mulf %173, %174 : vector<8x128xf32>
    %176 = arith.addf %170, %175 : vector<8x128xf32>
    %177 = vector.extract_strided_slice %31 {offsets = [0, 3], sizes = [8, 1], strides = [1, 1]} : vector<8x32xf32> to vector<8x1xf32>
    %178 = vector.extract_strided_slice %2 {offsets = [3, 0], sizes = [1, 128], strides = [1, 1]} : vector<33x128xf32> to vector<1x128xf32>
    %179 = vector.broadcast %177 : vector<8x1xf32> to vector<8x128xf32>
    %180 = vector.broadcast %178 : vector<1x128xf32> to vector<8x128xf32>
    %181 = arith.mulf %179, %180 : vector<8x128xf32>
    %182 = vector.extract_strided_slice %31 {offsets = [0, 7], sizes = [8, 1], strides = [1, 1]} : vector<8x32xf32> to vector<8x1xf32>
    %183 = vector.extract_strided_slice %2 {offsets = [7, 0], sizes = [1, 128], strides = [1, 1]} : vector<33x128xf32> to vector<1x128xf32>
    %184 = vector.broadcast %182 : vector<8x1xf32> to vector<8x128xf32>
    %185 = vector.broadcast %183 : vector<1x128xf32> to vector<8x128xf32>
    %186 = arith.mulf %184, %185 : vector<8x128xf32>
    %187 = arith.addf %181, %186 : vector<8x128xf32>
    %188 = vector.extract_strided_slice %31 {offsets = [0, 11], sizes = [8, 1], strides = [1, 1]} : vector<8x32xf32> to vector<8x1xf32>
    %189 = vector.extract_strided_slice %2 {offsets = [11, 0], sizes = [1, 128], strides = [1, 1]} : vector<33x128xf32> to vector<1x128xf32>
    %190 = vector.broadcast %188 : vector<8x1xf32> to vector<8x128xf32>
    %191 = vector.broadcast %189 : vector<1x128xf32> to vector<8x128xf32>
    %192 = arith.mulf %190, %191 : vector<8x128xf32>
    %193 = arith.addf %187, %192 : vector<8x128xf32>
    %194 = vector.extract_strided_slice %31 {offsets = [0, 15], sizes = [8, 1], strides = [1, 1]} : vector<8x32xf32> to vector<8x1xf32>
    %195 = vector.extract_strided_slice %2 {offsets = [15, 0], sizes = [1, 128], strides = [1, 1]} : vector<33x128xf32> to vector<1x128xf32>
    %196 = vector.broadcast %194 : vector<8x1xf32> to vector<8x128xf32>
    %197 = vector.broadcast %195 : vector<1x128xf32> to vector<8x128xf32>
    %198 = arith.mulf %196, %197 : vector<8x128xf32>
    %199 = arith.addf %193, %198 : vector<8x128xf32>
    %200 = vector.extract_strided_slice %31 {offsets = [0, 19], sizes = [8, 1], strides = [1, 1]} : vector<8x32xf32> to vector<8x1xf32>
    %201 = vector.extract_strided_slice %2 {offsets = [19, 0], sizes = [1, 128], strides = [1, 1]} : vector<33x128xf32> to vector<1x128xf32>
    %202 = vector.broadcast %200 : vector<8x1xf32> to vector<8x128xf32>
    %203 = vector.broadcast %201 : vector<1x128xf32> to vector<8x128xf32>
    %204 = arith.mulf %202, %203 : vector<8x128xf32>
    %205 = arith.addf %199, %204 : vector<8x128xf32>
    %206 = vector.extract_strided_slice %31 {offsets = [0, 23], sizes = [8, 1], strides = [1, 1]} : vector<8x32xf32> to vector<8x1xf32>
    %207 = vector.extract_strided_slice %2 {offsets = [23, 0], sizes = [1, 128], strides = [1, 1]} : vector<33x128xf32> to vector<1x128xf32>
    %208 = vector.broadcast %206 : vector<8x1xf32> to vector<8x128xf32>
    %209 = vector.broadcast %207 : vector<1x128xf32> to vector<8x128xf32>
    %210 = arith.mulf %208, %209 : vector<8x128xf32>
    %211 = arith.addf %205, %210 : vector<8x128xf32>
    %212 = vector.extract_strided_slice %31 {offsets = [0, 27], sizes = [8, 1], strides = [1, 1]} : vector<8x32xf32> to vector<8x1xf32>
    %213 = vector.extract_strided_slice %2 {offsets = [27, 0], sizes = [1, 128], strides = [1, 1]} : vector<33x128xf32> to vector<1x128xf32>
    %214 = vector.broadcast %212 : vector<8x1xf32> to vector<8x128xf32>
    %215 = vector.broadcast %213 : vector<1x128xf32> to vector<8x128xf32>
    %216 = arith.mulf %214, %215 : vector<8x128xf32>
    %217 = arith.addf %211, %216 : vector<8x128xf32>
    %218 = vector.extract_strided_slice %31 {offsets = [0, 31], sizes = [8, 1], strides = [1, 1]} : vector<8x32xf32> to vector<8x1xf32>
    %219 = vector.extract_strided_slice %2 {offsets = [31, 0], sizes = [1, 128], strides = [1, 1]} : vector<33x128xf32> to vector<1x128xf32>
    %220 = vector.broadcast %218 : vector<8x1xf32> to vector<8x128xf32>
    %221 = vector.broadcast %219 : vector<1x128xf32> to vector<8x128xf32>
    %222 = arith.mulf %220, %221 : vector<8x128xf32>
    %223 = arith.addf %217, %222 : vector<8x128xf32>
    %224 = arith.addf %82, %129 : vector<8x128xf32>
    %225 = arith.addf %176, %223 : vector<8x128xf32>
    %226 = arith.addf %224, %225 : vector<8x128xf32>
    %c0_5 = arith.constant 0 : index
    %c0_6 = arith.constant 0 : index
    %227 = vector.load %arg3[%c0_5, %c0_6] : memref<8x128xf32, #tpu.memory_space<vmem>>, vector<8x128xf32>
    tpu.vector_store %arg3[%c0_5, %c0_6], %226 {strides = array<i32>} : memref<8x128xf32, #tpu.memory_space<vmem>>, vector<8x128xf32>,
    return
  }
}

</mosaic_0001>

<bundles_post_ra>
// kernel: mlp_forward.1
= control target key start
LH: loop header
LB: loop body
LE: loop exit
PB: predicated region body
PF: predicated region fallthrough
CT: control target
= control target key end

     0   :  { %8 = vsyncpa [#allocation3], 0  ;;  %s508_s12 = smov [#allocation2]   ;;  %s722_s0 = inlined_call_operand.vmem [shape: f32[8,4], index: 0, kind: input, shape index: {}]   ;;  %s723_s1 = inlined_call_operand.vmem [shape: f32[5,32], index: 1, kind: input, shape index: {}]   ;;  %s724_s2 = inlined_call_operand.hbm [shape: f32[33,128], index: 2, kind: input, shape index: {}]   ;;  %s725_s3 = inlined_call_operand.vmem [shape: f32[8,128], index: 3, kind: output, shape index: {}]  }
   0x1   :  { %s18_s13 = sshll.u32 %s508_s12, 4  ;;  %s484_s16 = scalar_lea.hbm %s724_s2, 640  ;;  %s19_s13 = int_to_ptr.vmem [resolvable:$true] %s18_s13 }
   0x2   :  { %p485_p0 = scmp.ne.s32.totalorder %s724_s2, %s484_s16  ;;  %p488_p1 = scmp.lt.u32.totalorder %s484_s16, %s724_s2 }
   0x4   :  { %p490_p2 = pnand %p488_p1, %p485_p0 }
   0x6   :  { %493 = shalt.err (!%p490_p2)
}
   0x7   :  { %s494_s21 = scalar_lea.vmem %s19_s13, 640  ;;  %p499_p4 = scmp.lt.s32.totalorder %s19_s13, %s19_s13 }
   0x8   :  { %p495_p3 = scmp.ne.s32.totalorder %s19_s13, %s494_s21  ;;  %p500_p5 = scmp.lt.s32.totalorder %s494_s21, %s494_s21 }
   0xa   :  { %p501_p6 = por %p500_p5, %p499_p4 }
   0xc   :  { %p502_p7 = pnand %p501_p6, %p495_p3 }
   0xe   :  { %505 = shalt.err (!%p502_p7)
}
   0xf   :  { %s509_s22 = smov 128   ;;  %s510_s23 = smov 8  }
  0x10   :  { %24 = dma.hbm_to_vmem [thread:$0]  %s724_s2, 640, %s19_s13, [#allocation3], %s509_s22, %s509_s22, %s510_s23  }
  0x11   :  { %506 = dma.done.wait [#allocation3], 640  }
  0x12   :  { %507 = vsyncadd [#allocation3], 4294966656  ;;  %v511_v0 = vmov 0   ;;  %v512_v1 = vmov 2   ;;  %v28_v2 = vld [vmem:[%s722_s0] sm:$0xff]  ;;  %v513_v3 = vmov 1   ;;  %v35_v6 = vlaneseq }
  0x13   :  { %448 = vset.pattern.permute.xlu0 %v511_v0  ;;  %450 = vset.pattern.permute.xlu1 %v512_v1  ;;  %v514_v4 = vmov 3   ;;  %v515_v5 = vmov 4   ;;  %v29_v9 = vld [vmem:[%s723_s1] sm:$0x1f]  ;;  %v516_v32 = vmov 16   ;;  %v517_v33 = vmov 8  }
  0x14   :  { %41 = vperm.xlu0 %448, %v28_v2   ;;  %61 = vperm.xlu1 %450, %v28_v2   ;;  %v579_v7 = vshrl.u32 %v35_v6, 7  ;;  %v518_v34 = vmov 28   ;;  %v519_v35 = vmov 12   ;;  %v520_v36 = vmov 9   ;;  %v639_v59 = vld [vmem:[#allocation2] sm:$0xff]  ;;  %v645_v62 = vld [vmem:[#allocation2 + $0x8] sm:$0xff] }
  0x15   :  { %v521_v37 = vmov 20   ;;  %v522_v38 = vmov 24   ;;  %v523_v39 = vmov 11   ;;  %v524_v40 = vmov 15  }
  0x16   :  { %v582_v8 = vsub.s32 0, %v579_v7  ;;  %v588_v10 = vsub.s32 4, %v579_v7  ;;  %v592_v12 = vsub.s32 1, %v579_v7  ;;  %v595_v14 = vsub.s32 2, %v579_v7 }
  0x17   :  { %v598_v16 = vsub.s32 3, %v579_v7  ;;  %v525_v41 = vmov 5   ;;  %v526_v42 = vmov 19   ;;  %v527_v43 = vmov 23  }
  0x18   :  { %449 = vset.pattern.permute.xlu0 %v513_v3  ;;  %451 = vset.pattern.permute.xlu1 %v514_v4  ;;  %v47_v11 = vrot.slane %v29_v9, %v582_v8  ;;  %v38_v17 = vrot.slane %v29_v9, %v588_v10  ;;  %v57_v19 = vrot.slane %v29_v9, %v592_v12  ;;  %v528_v44 = vmov 6  }
  0x19   :  { %51 = vperm.xlu0 %449, %v28_v2   ;;  %71 = vperm.xlu1 %451, %v28_v2   ;;  %v67_v20 = vrot.slane %v29_v9, %v595_v14  ;;  %v77_v21 = vrot.slane %v29_v9, %v598_v16  ;;  %v529_v45 = vmov 27   ;;  %v530_v46 = vmov 7  }
  0x1a   :  { %v531_v47 = vmov 31   ;;  %v532_v48 = vmov 10   ;;  %v533_v49 = vmov 13   ;;  %v534_v50 = vmov 14  }
  0x1b   :  { %v535_v51 = vmov 17   ;;  %v536_v52 = vmov 18   ;;  %v537_v53 = vmov 21   ;;  %v538_v54 = vmov 22  }
  0x1c   :  { %v539_v55 = vmov 25   ;;  %v540_v56 = vmov 26   ;;  %v541_v57 = vmov 29   ;;  %v542_v58 = vmov 30  }
  0x1d   :  { %452 = vset.pattern.permute.xlu1 %v511_v0  ;;  %453 = vset.pattern.permute.xlu0 %v515_v5  ;;  %v93_v60 = vrot.slane %v639_v59, %v582_v8  ;;  %v103_v61 = vrot.slane %v639_v59, %v588_v10  ;;  %v412_v0 = vld [vmem:[#allocation2 + $0x20] ss:$0 sm:$0xff] }
  0x93   :  { %v42_v13 = vpop.permute.xlu0 %41  ;;  %v62_v15 = vpop.permute.xlu1 %61 }
  0x94   :  { %v48_v18 = vmul.f32 %v47_v11, %v42_v13  ;;  %v68_v26 = vmul.f32 %v67_v20, %v62_v15  ;;  %v649_v11 = vld [vmem:[#allocation2 + $0x10] sm:$0xff]  ;;  %v123_v15 = vrot.slane %v645_v62, %v588_v10 }
  0x96   :  { %v49_v24 = vadd.f32 %v48_v18, %v38_v17  ;;  %v133_v18 = vrot.slane %v649_v11, %v582_v8 }
  0x98   :  { %v52_v22 = vpop.permute.xlu0 %51  ;;  %v72_v23 = vpop.permute.xlu1 %71 }
  0x99   :  { %v58_v25 = vmul.f32 %v57_v19, %v52_v22  ;;  %v78_v28 = vmul.f32 %v77_v21, %v72_v23  ;;  %v143_v22 = vrot.slane %v649_v11, %v588_v10 }
  0x9b   :  { %v59_v27 = vadd.f32 %v58_v25, %v49_v24 }
  0x9d   :  { %v69_v29 = vadd.f32 %v68_v26, %v59_v27 }
  0x9f   :  { %v79_v30 = vadd.f32 %v78_v28, %v69_v29 }
  0xa1   :  { %v604_v31 = vmax.f32 %v79_v30, 0.0 }
  0xa3   :  { %97 = vperm.xlu0 %453, %v604_v31   ;;  %87 = vperm.xlu1 %452, %v604_v31  }
  0xa7   :  { %456 = vset.pattern.permute.xlu0 %v516_v32  ;;  %454 = vset.pattern.permute.xlu1 %v517_v33 }
  0xa8   :  { %127 = vperm.xlu0 %456, %v604_v31   ;;  %107 = vperm.xlu1 %454, %v604_v31  }
  0xac   :  { %459 = vset.pattern.permute.xlu0 %v518_v34  ;;  %455 = vset.pattern.permute.xlu1 %v519_v35 }
  0xad   :  { %157 = vperm.xlu0 %459, %v604_v31   ;;  %117 = vperm.xlu1 %455, %v604_v31  }
  0xb1   :  { %462 = vset.pattern.permute.xlu0 %v520_v36  ;;  %457 = vset.pattern.permute.xlu1 %v521_v37 }
  0xb2   :  { %186 = vperm.xlu0 %462, %v604_v31   ;;  %137 = vperm.xlu1 %457, %v604_v31  }
  0xb6   :  { %465 = vset.pattern.permute.xlu0 %v514_v4  ;;  %458 = vset.pattern.permute.xlu1 %v522_v38 }
  0xb7   :  { %325 = vperm.xlu0 %465, %v604_v31   ;;  %147 = vperm.xlu1 %458, %v604_v31  }
  0xbb   :  { %468 = vset.pattern.permute.xlu0 %v523_v39  ;;  %460 = vset.pattern.permute.xlu1 %v513_v3  ;;  %v113_v3 = vrot.slane %v645_v62, %v582_v8 }
  0xbc   :  { %344 = vperm.xlu0 %468, %v604_v31   ;;  %167 = vperm.xlu1 %460, %v604_v31  }
  0xc0   :  { %471 = vset.pattern.permute.xlu0 %v524_v40  ;;  %461 = vset.pattern.permute.xlu1 %v525_v41 }
  0xc1   :  { %354 = vperm.xlu0 %471, %v604_v31   ;;  %176 = vperm.xlu1 %461, %v604_v31  }
  0xc5   :  { %474 = vset.pattern.permute.xlu0 %v526_v42  ;;  %463 = vset.pattern.permute.xlu1 %v512_v1 }
  0xc6   :  { %364 = vperm.xlu0 %474, %v604_v31   ;;  %246 = vperm.xlu1 %463, %v604_v31  }
  0xca   :  { %477 = vset.pattern.permute.xlu0 %v527_v43  ;;  %464 = vset.pattern.permute.xlu1 %v528_v44  ;;  %v664_v43 = vsub.s32 7, %v579_v7 }
  0xcb   :  { %374 = vperm.xlu0 %477, %v604_v31   ;;  %255 = vperm.xlu1 %464, %v604_v31  }
  0xcc   :  { %v340_v44 = vrot.slane %v639_v59, %v664_v43 }
  0xcf   :  { %480 = vset.pattern.permute.xlu0 %v529_v45  ;;  %466 = vset.pattern.permute.xlu1 %v530_v46  ;;  %v331_v46 = vrot.slane %v639_v59, %v598_v16 }
  0xd0   :  { %384 = vperm.xlu0 %480, %v604_v31   ;;  %334 = vperm.xlu1 %466, %v604_v31  }
  0xd4   :  { %483 = vset.pattern.permute.xlu0 %v531_v47  ;;  %467 = vset.pattern.permute.xlu1 %v532_v48 }
  0xd5   :  { %394 = vperm.xlu0 %483, %v604_v31   ;;  %265 = vperm.xlu1 %467, %v604_v31  }
  0xd9   :  { %469 = vset.pattern.permute.xlu1 %v533_v49  ;;  %v671_v49 = vsub.s32 5, %v579_v7 }
  0xda   :  { %196 = vperm.xlu1 %469, %v604_v31  }
  0xde   :  { %470 = vset.pattern.permute.xlu1 %v534_v50 }
  0xdf   :  { %275 = vperm.xlu1 %470, %v604_v31  }
  0xe3   :  { %472 = vset.pattern.permute.xlu1 %v535_v51 }
  0xe4   :  { %206 = vperm.xlu1 %472, %v604_v31  }
  0xe8   :  { %473 = vset.pattern.permute.xlu1 %v536_v52  ;;  %v350_v52 = vrot.slane %v645_v62, %v598_v16 }
  0xe9   :  { %285 = vperm.xlu1 %473, %v604_v31  }
  0xed   :  { %475 = vset.pattern.permute.xlu1 %v537_v53 }
  0xee   :  { %216 = vperm.xlu1 %475, %v604_v31  }
  0xf2   :  { %476 = vset.pattern.permute.xlu1 %v538_v54  ;;  %v182_v54 = vrot.slane %v639_v59, %v671_v49 }
  0xf3   :  { %295 = vperm.xlu1 %476, %v604_v31  }
  0xf7   :  { %478 = vset.pattern.permute.xlu1 %v539_v55  ;;  %v678_v55 = vsub.s32 6, %v579_v7  ;;  %v370_v7 = vrot.slane %v649_v11, %v598_v16 }
  0xf8   :  { %226 = vperm.xlu1 %478, %v604_v31  }
  0xfc   :  { %479 = vset.pattern.permute.xlu1 %v540_v56 }
  0xfd   :  { %305 = vperm.xlu1 %479, %v604_v31  }
 0x101   :  { %481 = vset.pattern.permute.xlu1 %v541_v57  ;;  %v360_v57 = vrot.slane %v645_v62, %v664_v43 }
 0x102   :  { %236 = vperm.xlu1 %481, %v604_v31  }
 0x106   :  { %482 = vset.pattern.permute.xlu1 %v542_v58 }
 0x107   :  { %315 = vperm.xlu1 %482, %v604_v31  }
 0x122   :  { %v98_v63 = vpop.permute.xlu0 %97  ;;  %v88_v1 = vpop.permute.xlu1 %87 }
 0x123   :  { %v94_v2 = vmul.f32 %v93_v60, %v88_v1  ;;  %v104_v4 = vmul.f32 %v103_v61, %v98_v63  ;;  %v173_v61 = vrot.slane %v639_v59, %v592_v12  ;;  %v261_v1 = vrot.slane %v639_v59, %v678_v55 }
 0x125   :  { %v95_v5 = vadd.f32 %v412_v0, %v94_v2  ;;  %v192_v2 = vrot.slane %v645_v62, %v592_v12 }
 0x127   :  { %v105_v6 = vadd.f32 %v104_v4, %v95_v5  ;;  %v108_v9 = vpop.permute.xlu1 %107  ;;  %v128_v19 = vpop.permute.xlu0 %127  ;;  %v252_v5 = vrot.slane %v639_v59, %v595_v14  ;;  %v380_v59 = vrot.slane %v649_v11, %v664_v43 }
 0x128   :  { %v114_v13 = vmul.f32 %v113_v3, %v108_v9  ;;  %v134_v23 = vmul.f32 %v133_v18, %v128_v19  ;;  %v202_v9 = vrot.slane %v645_v62, %v671_v49 }
 0x12a   :  { %v115_v17 = vadd.f32 %v114_v13, %v105_v6  ;;  %v271_v6 = vrot.slane %v645_v62, %v595_v14 }
 0x12c   :  { %v118_v20 = vpop.permute.xlu1 %117  ;;  %v661_v35 = vpop.permute.xlu0 %157 }
 0x12d   :  { %v124_v21 = vmul.f32 %v123_v15, %v118_v20  ;;  %v281_v20 = vrot.slane %v645_v62, %v678_v55 }
 0x12f   :  { %v125_v24 = vadd.f32 %v124_v21, %v115_v17  ;;  %v212_v21 = vrot.slane %v649_v11, %v592_v12 }
 0x131   :  { %v135_v25 = vadd.f32 %v134_v23, %v125_v24  ;;  %v138_v26 = vpop.permute.xlu1 %137  ;;  %v187_v38 = vpop.permute.xlu0 %186  ;;  %v291_v23 = vrot.slane %v649_v11, %v595_v14  ;;  %v222_v24 = vrot.slane %v649_v11, %v671_v49 }
 0x132   :  { %v144_v27 = vmul.f32 %v143_v22, %v138_v26  ;;  %v193_v26 = vmul.f32 %v192_v2, %v187_v38 }
 0x134   :  { %v657_v28 = vadd.f32 %v144_v27, %v135_v25  ;;  %v33_v25 = vld [vmem:[#allocation2 + $0x18] sm:$0xff] }
 0x135   :  { %v153_v62 = vrot.slane %v33_v25, %v582_v8 }
 0x136   :  { %v659_v29 = vpop.permute.xlu1 %147  ;;  %v326_v40 = vpop.permute.xlu0 %325 }
 0x137   :  { %v332_v51 = vmul.f32 %v331_v46, %v326_v40  ;;  %v232_v40 = vrot.slane %v33_v25, %v592_v12 }
 0x13b   :  { %v168_v30 = vpop.permute.xlu1 %167  ;;  %v345_v42 = vpop.permute.xlu0 %344 }
 0x13c   :  { %v351_v56 = vmul.f32 %v350_v52, %v345_v42  ;;  %v174_v4 = vmul.f32 %v173_v61, %v168_v30  ;;  %v390_v52 = vrot.slane %v33_v25, %v598_v16  ;;  %v163_v61 = vrot.slane %v33_v25, %v588_v10 }
 0x140   :  { %v177_v31 = vpop.permute.xlu1 %176  ;;  %v355_v47 = vpop.permute.xlu0 %354 }
 0x141   :  { %v183_v0 = vmul.f32 %v182_v54, %v177_v31  ;;  %v361_v3 = vmul.f32 %v360_v57, %v355_v47 }
 0x143   :  { %v184_v18 = vadd.f32 %v183_v0, %v174_v4 }
 0x145   :  { %v247_v32 = vpop.permute.xlu1 %246  ;;  %v365_v58 = vpop.permute.xlu0 %364  ;;  %v194_v46 = vadd.f32 %v193_v26, %v184_v18 }
 0x146   :  { %v371_v22 = vmul.f32 %v370_v7, %v365_v58  ;;  %v253_v27 = vmul.f32 %v252_v5, %v247_v32  ;;  %v311_v32 = vrot.slane %v33_v25, %v595_v14  ;;  %v321_v14 = vrot.slane %v33_v25, %v678_v55 }
 0x14a   :  { %v256_v33 = vpop.permute.xlu1 %255  ;;  %v375_v15 = vpop.permute.xlu0 %374 }
 0x14b   :  { %v262_v19 = vmul.f32 %v261_v1, %v256_v33 }
 0x14f   :  { %v335_v34 = vpop.permute.xlu1 %334  ;;  %v385_v38 = vpop.permute.xlu0 %384 }
 0x150   :  { %v341_v48 = vmul.f32 %v340_v44, %v335_v34  ;;  %v301_v34 = vrot.slane %v649_v11, %v678_v55  ;;  %v263_v44 = vadd.f32 %v262_v19, %v253_v27  ;;  %v154_v11 = vmul.f32 %v153_v62, %v659_v29 }
 0x151   :  { %v391_v16 = vmul.f32 %v390_v52, %v385_v38 }
 0x152   :  { %v342_v53 = vadd.f32 %v341_v48, %v332_v51  ;;  %v381_v51 = vmul.f32 %v380_v59, %v375_v15  ;;  %v155_v29 = vadd.f32 %v154_v11, %v657_v28 }
 0x154   :  { %v266_v36 = vpop.permute.xlu1 %265  ;;  %v352_v63 = vadd.f32 %v351_v56, %v342_v53 }
 0x155   :  { %v272_v30 = vmul.f32 %v271_v6, %v266_v36  ;;  %v242_v36 = vrot.slane %v33_v25, %v671_v49 }
 0x156   :  { %v362_v17 = vadd.f32 %v361_v3, %v352_v63  ;;  %v400_v63 = vrot.slane %v33_v25, %v664_v43 }
 0x157   :  { %v273_v8 = vadd.f32 %v272_v30, %v263_v44 }
 0x158   :  { %v372_v33 = vadd.f32 %v371_v22, %v362_v17 }
 0x159   :  { %v197_v37 = vpop.permute.xlu1 %196 }
 0x15a   :  { %v203_v31 = vmul.f32 %v202_v9, %v197_v37  ;;  %v382_v12 = vadd.f32 %v381_v51, %v372_v33 }
 0x15c   :  { %v204_v37 = vadd.f32 %v203_v31, %v194_v46  ;;  %v392_v2 = vadd.f32 %v391_v16, %v382_v12 }
 0x15e   :  { %v276_v39 = vpop.permute.xlu1 %275 }
 0x15f   :  { %v282_v47 = vmul.f32 %v281_v20, %v276_v39 }
 0x161   :  { %v283_v56 = vadd.f32 %v282_v47, %v273_v8 }
 0x163   :  { %v207_v41 = vpop.permute.xlu1 %206 }
 0x164   :  { %v213_v48 = vmul.f32 %v212_v21, %v207_v41 }
 0x166   :  { %v214_v57 = vadd.f32 %v213_v48, %v204_v37 }
 0x168   :  { %v286_v45 = vpop.permute.xlu1 %285 }
 0x169   :  { %v292_v53 = vmul.f32 %v291_v23, %v286_v45 }
 0x16b   :  { %v293_v49 = vadd.f32 %v292_v53, %v283_v56 }
 0x16d   :  { %v217_v50 = vpop.permute.xlu1 %216 }
 0x16e   :  { %v223_v54 = vmul.f32 %v222_v24, %v217_v50  ;;  %v395_v50 = vpop.permute.xlu0 %394 }
 0x16f   :  { %v401_v5 = vmul.f32 %v400_v63, %v395_v50 }
 0x170   :  { %v224_v0 = vadd.f32 %v223_v54, %v214_v57 }
 0x172   :  { %v296_v60 = vpop.permute.xlu1 %295 }
 0x173   :  { %v302_v58 = vmul.f32 %v301_v34, %v296_v60  ;;  %v164_v60 = vmul.f32 %v163_v61, %v661_v35 }
 0x175   :  { %v303_v3 = vadd.f32 %v302_v58, %v293_v49  ;;  %v165_v43 = vadd.f32 %v164_v60, %v155_v29 }
 0x177   :  { %v227_v13 = vpop.permute.xlu1 %226 }
 0x178   :  { %v233_v39 = vmul.f32 %v232_v40, %v227_v13  ;;  %v402_v13 = vadd.f32 %v401_v5, %v392_v2 }
 0x17a   :  { %v234_v7 = vadd.f32 %v233_v39, %v224_v0 }
 0x17c   :  { %v306_v42 = vpop.permute.xlu1 %305 }
 0x17d   :  { %v312_v1 = vmul.f32 %v311_v32, %v306_v42 }
 0x17f   :  { %v313_v10 = vadd.f32 %v312_v1, %v303_v3 }
 0x181   :  { %v237_v41 = vpop.permute.xlu1 %236 }
 0x182   :  { %v243_v45 = vmul.f32 %v242_v36, %v237_v41 }
 0x184   :  { %v244_v6 = vadd.f32 %v243_v45, %v234_v7 }
 0x186   :  { %v316_v4 = vpop.permute.xlu1 %315  ;;  %v403_v15 = vadd.f32 %v244_v6, %v165_v43 }
 0x187   :  { %v322_v9 = vmul.f32 %v321_v14, %v316_v4 }
 0x189   :  { %v323_v55 = vadd.f32 %v322_v9, %v313_v10 }
 0x18b   :  { %v404_v17 = vadd.f32 %v402_v13, %v323_v55 }
 0x18d   :  { %v405_v18 = vadd.f32 %v404_v17, %v403_v15 }
 0x18f   :  { %406 = vst [vmem:[%s725_s3] sm:$0xff] %v405_v18 }
 0x190   :  { %411 = vsyncpa [#allocation3], 1 }

</bundles_post_ra>
